<compile_context>
chip_gen: v7x
topology: tpu7x:2x2x1
jax: 0.10.0
libtpu: 0.0.40
codegen_flags: <defaults>
</compile_context>

<pallas_src>
import functools

import jax
import jax.numpy as jnp
import numpy as np
from jax.experimental import pallas as pl
from jax.experimental.pallas import tpu as pltpu


def _ge2e_kernel(w_ref, b_ref, e_ref, lab_row_ref, lab_col_ref, loss_ref, *, N, M):
    # w_ref, b_ref : (1, 1) f32 in SMEM
    # e_ref        : (NM, Dp) f32 in VMEM (zero-padded along D)
    # lab_row_ref  : (1, NM) int32 in VMEM (speaker id per row, lane layout)
    # lab_col_ref  : (NM, 1) int32 in VMEM (speaker id per row, sublane layout)
    # loss_ref     : (1, 1) f32 in SMEM
    e = e_ref[...]                                   # (NM, Dp) f32
    lab_row = lab_row_ref[...]                       # (1, NM) int32
    lab_col = lab_col_ref[...]                       # (NM, 1) int32
    w = w_ref[0, 0]
    b = b_ref[0, 0]
    NM = N * M
    Dp = e.shape[-1]
    inv_M = jnp.float32(1.0 / M)
    inv_M1 = jnp.float32(1.0 / (M - 1))

    # Speaker-membership one-hot, built once per layout it is consumed in (both are
    # tiny; building each directly from an iota avoids any in-kernel transpose).
    own_T = jax.lax.broadcasted_iota(jnp.int32, (N, NM), 0) == lab_row    # (N, NM)
    own_col = jax.lax.broadcasted_iota(jnp.int32, (NM, N), 1) == lab_col  # (NM, N)

    # Per-speaker sums s[j] = sum of e rows of speaker j.  Canonical (N,NM)x(NM,Dp)
    # matmul, kept in f32: it feeds the exact leave-one-out path below, so bf16
    # rounding here would leak into the target logits.
    s = jax.lax.dot_general(
        own_T.astype(jnp.float32), e, (((1,), (0,)), ((), ())),
        preferred_element_type=jnp.float32)          # (N, Dp) == M * centroid

    # Off-diagonal similarities, bf16 operands / f32 accumulation, transposed
    # (N, NM) output so every downstream VPU/softmax op is lane-dense along NM.
    e_bf = e.astype(jnp.bfloat16)                    # hoisted, reused below
    sum_dot_T = jax.lax.dot_general(
        s.astype(jnp.bfloat16), e_bf, (((1,), (1,)), ((), ())),
        preferred_element_type=jnp.float32)          # (N, NM)  == s_j . e_r

    # Exact (f32) leave-one-out similarity for the target column:
    #   corr[r] = e_r . (s[label_r] - e_r) / (M - 1)
    # The ||e_r||^2 cancellation happens in f32, and sqnorm never needs to be
    # computed separately (no L2-normalization assumption required).
    s_gathered = jax.lax.dot_general(
        own_col.astype(jnp.float32), s, (((1,), (0,)), ((), ())),
        preferred_element_type=jnp.float32)          # (NM, Dp) = s[label_r]
    loo = e * (s_gathered - e)                       # (NM, Dp) f32
    ones8 = jnp.ones((8, Dp), jnp.float32)           # sublane-aligned row-reducer
    loo_rows = jax.lax.dot_general(
        ones8, loo, (((1,), (1,)), ((), ())),
        preferred_element_type=jnp.float32)          # (8, NM), rows identical
    corr_sim = loo_rows[0:1, :] * inv_M1             # (1, NM)  exact e_r . c_loo

    # Assemble logits in (N, NM); diagonal replaced by the exact f32 correction.
    sim = jnp.where(own_T, corr_sim, sum_dot_T * inv_M)   # (N, NM)
    z = w * sim + b                                        # (N, NM)
    z_tgt = w * corr_sim + b                               # (1, NM) target logits

    # Cross entropy (mean reduction): softmax over the speaker (sublane) axis,
    # all per-row vectors stay lane-dense (1, NM).
    z_max = jnp.max(z, axis=0, keepdims=True)              # (1, NM)
    lse = jnp.log(jnp.sum(jnp.exp(z - z_max), axis=0, keepdims=True)) + z_max
    per_row = lse - z_tgt                                   # (1, NM)
    loss_ref[0, 0] = jnp.sum(per_row) * jnp.float32(1.0 / NM)


def _physical_vmem_bytes():
    """Best-effort physical VMEM size (per TensorCore) for the current chip."""
    try:
        info = pltpu.get_tpu_info()
        cap = getattr(info, "vmem_capacity_bytes", None)
        if cap:
            return int(cap)
    except Exception:
        pass
    return 64 * 1024 * 1024  # conservative fallback (v7x physical VMEM)


def ge2e_loss(e, w, b, N, M):
    """e: (N, M, D) float32 (as produced after L2 norm). Returns scalar loss."""
    assert M > 1, "GE2E leave-one-out correction requires M > 1"
    D = e.shape[-1]
    NM = N * M
    Dp = ((D + 127) // 128) * 128                    # lane-pad D (zero pad = no-op)
    e2 = e.reshape(NM, D).astype(jnp.float32)
    if Dp != D:
        e2 = jnp.pad(e2, ((0, 0), (0, Dp - D)))

    labels = jnp.repeat(jnp.arange(N, dtype=jnp.int32), M)
    lab_row = labels.reshape(1, NM)
    lab_col = labels.reshape(NM, 1)
    w_arr = jnp.asarray(w, jnp.float32).reshape(1, 1)
    b_arr = jnp.asarray(b, jnp.float32).reshape(1, 1)

    # Real single-block footprint (gridless call => one pipeline step, so e is
    # counted once), + ~30% headroom.  Cap per chip generation from physical VMEM
    # (~0.85x: ~54 MiB on v7x / ~109 MiB on v5e-v6e); the 32 MiB floor just keeps
    # at least the default scoped limit of v6e/v7x (and raises v5e's 16 MiB).
    vmem_need = (
        NM * Dp * 4          # e (f32)
        + NM * Dp * 2        # hoisted bf16 copy of e
        + 2 * NM * Dp * 4    # s_gathered + leave-one-out product (f32)
        + 2 * NM * N * 4     # one-hot masks (f32)
        + 3 * N * NM * 4     # sum_dot_T / sim / exp intermediates
        + 2 * N * Dp * 4     # s (f32 + bf16 copy)
        + 8 * NM * 4         # label vectors + (1, NM) row vectors
    )
    vmem_need = int(vmem_need * 1.3)
    cap = int(_physical_vmem_bytes() * 0.85)
    vmem_limit = min(max(vmem_need, 32 * 1024 * 1024), cap)
    # TODO(synk): if vmem_need > cap, fall back to the row-tiled grid variant.

    kernel = functools.partial(_ge2e_kernel, N=N, M=M)
    out = pl.pallas_call(
        kernel,
        out_shape=jax.ShapeDtypeStruct((1, 1), jnp.float32),
        in_specs=[
            pl.BlockSpec(memory_space=pltpu.SMEM),        # w
            pl.BlockSpec(memory_space=pltpu.SMEM),        # b
            pl.BlockSpec((NM, Dp), lambda: (0, 0)),       # e (full block in VMEM)
            pl.BlockSpec((1, NM), lambda: (0, 0)),        # labels, lane layout
            pl.BlockSpec((NM, 1), lambda: (0, 0)),        # labels, sublane layout
        ],
        out_specs=pl.BlockSpec(memory_space=pltpu.SMEM),  # scalar loss via SMEM
        compiler_params=pltpu.CompilerParams(vmem_limit_bytes=vmem_limit),
    )(w_arr, b_arr, e2, lab_row, lab_col)
    return out[0, 0]


def _ge2e_loss_ref(e, w, b, N, M):
    """Pure-JAX (f32) reference mirroring the PyTorch forward."""
    D = e.shape[-1]
    c = jnp.mean(e, axis=1)                       # (N, D)
    s = jnp.sum(e, axis=1)                        # (N, D)
    e2 = e.reshape(N * M, D)
    sim = e2 @ c.T                                # (NM, N)
    sum_dot = e2 @ s.T
    sqnorm = jnp.sum(e2 * e2, axis=-1, keepdims=True)
    corr = (sum_dot - sqnorm) / (M - 1)
    labels = jnp.arange(N * M) // M
    own = jax.nn.one_hot(labels, N, dtype=bool)
    sim = jnp.where(own, corr, sim)
    sim = w * sim + b
    logp = jax.nn.log_softmax(sim, axis=-1)
    return -jnp.mean(jnp.sum(jnp.where(own, logp, 0.0), axis=-1))


if __name__ == "__main__":
    # Parameters as in GE2ELoss.__init__
    w = jnp.float32(10.0)
    b = jnp.float32(-5.0)

    # Small deterministic inputs: N=4 speakers, M=5 utterances, D=32 dims.
    N, M, D = 4, 5, 32
    key = jax.random.PRNGKey(0)
    e = jax.random.normal(key, (N, M, D), dtype=jnp.float32)
    e = e / jnp.linalg.norm(e, axis=-1, keepdims=True)   # "after L2 norm"

    loss = ge2e_loss(e, w, b, N, M)
    loss = jax.block_until_ready(loss)

    ref = _ge2e_loss_ref(e, w, b, N, M)
    # Target-column (diagonal) terms are exact f32; only off-diagonal similarities
    # carry bf16 operand rounding, so the tolerance is tighter than before.
    assert np.allclose(np.asarray(loss), np.asarray(ref), rtol=1e-2, atol=1e-2), (
        loss, ref)

    print("KERNEL_OK")
</pallas_src>

<mosaic_0001>
module attributes {stable_mosaic.version = 11 : i64} {
  func.func @_ge2e_kernel(%arg0: memref<1x1xf32, #tpu.memory_space<smem>>, %arg1: memref<1x1xf32, #tpu.memory_space<smem>>, %arg2: memref<20x128xf32, #tpu.memory_space<vmem>>, %arg3: memref<1x20xi32, #tpu.memory_space<vmem>>, %arg4: memref<20x1xi32, #tpu.memory_space<vmem>>, %arg5: memref<1x1xf32, #tpu.memory_space<smem>>) attributes {dimension_semantics = [], scalar_prefetch = 0 : i64, scratch_operands = 0 : i64, tpu.core_type = #tpu.core_type<tc>} {
    %c0 = arith.constant 0 : index
    %c0_0 = arith.constant 0 : index
    %0 = vector.load %arg2[%c0, %c0_0] : memref<20x128xf32, #tpu.memory_space<vmem>>, vector<20x128xf32>
    %c0_1 = arith.constant 0 : index
    %c0_2 = arith.constant 0 : index
    %1 = vector.load %arg3[%c0_1, %c0_2] : memref<1x20xi32, #tpu.memory_space<vmem>>, vector<1x20xi32>
    %c0_3 = arith.constant 0 : index
    %c0_4 = arith.constant 0 : index
    %2 = vector.load %arg4[%c0_3, %c0_4] : memref<20x1xi32, #tpu.memory_space<vmem>>, vector<20x1xi32>
    %c0_5 = arith.constant 0 : index
    %c0_6 = arith.constant 0 : index
    %3 = memref.load %arg0[%c0_5, %c0_6] : memref<1x1xf32, #tpu.memory_space<smem>>
    %c0_7 = arith.constant 0 : index
    %c0_8 = arith.constant 0 : index
    %4 = memref.load %arg1[%c0_7, %c0_8] : memref<1x1xf32, #tpu.memory_space<smem>>
    %5 = tpu.iota {dimensions = array<i32: 0>} : vector<4x20xi32>
    %6 = vector.broadcast %1 : vector<1x20xi32> to vector<4x20xi32>
    %7 = arith.cmpi eq, %5, %6 : vector<4x20xi32>
    %8 = tpu.iota {dimensions = array<i32: 1>} : vector<20x4xi32>
    %9 = vector.broadcast %2 : vector<20x1xi32> to vector<20x4xi32>
    %10 = arith.cmpi eq, %8, %9 : vector<20x4xi32>
    %11 = arith.extui %7 : vector<4x20xi1> to vector<4x20xi32>
    %12 = arith.sitofp %11 : vector<4x20xi32> to vector<4x20xf32>
    %cst = arith.constant dense<0.000000e+00> : vector<4x128xf32>
    %13 = tpu.matmul %12, %0, %cst {dimension_numbers = #tpu.dot_dimension_numbers<[1], [0], [0], [1], [0, 0, 1, 1], [], []>} : vector<4x20xf32>, vector<20x128xf32>, vector<4x128xf32> -> vector<4x128xf32>
    %14 = arith.truncf %0 : vector<20x128xf32> to vector<20x128xbf16>
    %15 = arith.truncf %13 : vector<4x128xf32> to vector<4x128xbf16>
    %cst_9 = arith.constant dense<0.000000e+00> : vector<4x20xf32>
    %16 = tpu.matmul %15, %14, %cst_9 {dimension_numbers = #tpu.dot_dimension_numbers<[1], [1], [0], [0], [0, 0, 1, 0], [], []>} : vector<4x128xbf16>, vector<20x128xbf16>, vector<4x20xf32> -> vector<4x20xf32>
    %17 = arith.extui %10 : vector<20x4xi1> to vector<20x4xi32>
    %18 = arith.sitofp %17 : vector<20x4xi32> to vector<20x4xf32>
    %cst_10 = arith.constant dense<0.000000e+00> : vector<20x128xf32>
    %19 = tpu.matmul %18, %13, %cst_10 {dimension_numbers = #tpu.dot_dimension_numbers<[1], [0], [0], [1], [0, 0, 1, 1], [], []>} : vector<20x4xf32>, vector<4x128xf32>, vector<20x128xf32> -> vector<20x128xf32>
    %20 = arith.subf %19, %0 : vector<20x128xf32>
    %21 = arith.mulf %0, %20 : vector<20x128xf32>
    %cst_11 = arith.constant 1.000000e+00 : f32
    %22 = vector.broadcast %cst_11 : f32 to vector<8x128xf32>
    %cst_12 = arith.constant dense<0.000000e+00> : vector<8x20xf32>
    %23 = tpu.matmul %22, %21, %cst_12 {dimension_numbers = #tpu.dot_dimension_numbers<[1], [1], [0], [0], [0, 0, 1, 0], [], []>} : vector<8x128xf32>, vector<20x128xf32>, vector<8x20xf32> -> vector<8x20xf32>
    %24 = vector.extract_strided_slice %23 {offsets = [0, 0], sizes = [1, 20], strides = [1, 1]} : vector<8x20xf32> to vector<1x20xf32>
    %cst_13 = arith.constant 2.500000e-01 : f32
    %25 = vector.broadcast %cst_13 : f32 to vector<1x20xf32>
    %26 = arith.mulf %24, %25 : vector<1x20xf32>
    %cst_14 = arith.constant 2.000000e-01 : f32
    %27 = vector.broadcast %cst_14 : f32 to vector<4x20xf32>
    %28 = arith.mulf %16, %27 : vector<4x20xf32>
    %29 = vector.shape_cast %26 : vector<1x20xf32> to vector<1x20xf32>
    %30 = vector.broadcast %29 : vector<1x20xf32> to vector<4x20xf32>
    %31 = arith.select %7, %30, %28 : vector<4x20xi1>, vector<4x20xf32>
    %32 = vector.broadcast %3 : f32 to vector<4x20xf32>
    %33 = arith.mulf %32, %31 : vector<4x20xf32>
    %34 = vector.broadcast %4 : f32 to vector<4x20xf32>
    %35 = arith.addf %33, %34 : vector<4x20xf32>
    %36 = vector.broadcast %3 : f32 to vector<1x20xf32>
    %37 = arith.mulf %36, %26 : vector<1x20xf32>
    %38 = vector.broadcast %4 : f32 to vector<1x20xf32>
    %39 = arith.addf %37, %38 : vector<1x20xf32>
    %cst_15 = arith.constant dense<0xFF800000> : vector<20xf32>
    %40 = vector.multi_reduction <maximumf>, %35, %cst_15 [0] : vector<4x20xf32> to vector<20xf32>
    %41 = vector.shape_cast %40 : vector<20xf32> to vector<1x20xf32>
    %42 = vector.broadcast %41 : vector<1x20xf32> to vector<4x20xf32>
    %43 = arith.subf %35, %42 : vector<4x20xf32>
    %44 = math.exp %43 : vector<4x20xf32>
    %cst_16 = arith.constant dense<0.000000e+00> : vector<20xf32>
    %45 = vector.multi_reduction <add>, %44, %cst_16 [0] : vector<4x20xf32> to vector<20xf32>
    %46 = vector.shape_cast %45 : vector<20xf32> to vector<1x20xf32>
    %47 = math.log %46 : vector<1x20xf32>
    %48 = arith.addf %47, %41 : vector<1x20xf32>
    %49 = arith.subf %48, %39 : vector<1x20xf32>
    %50 = vector.shape_cast %49 : vector<1x20xf32> to vector<1x1x20xf32>
    %cst_17 = arith.constant dense<0.000000e+00> : vector<1xf32>
    %51 = vector.multi_reduction <add>, %50, %cst_17 [1, 2] : vector<1x1x20xf32> to vector<1xf32>
    %52 = vector.shape_cast %51 : vector<1xf32> to vector<1x1x1xf32>
    %53 = vector.extract %52[0, 0, 0] : f32 from vector<1x1x1xf32>
    %cst_18 = arith.constant 5.000000e-02 : f32
    %54 = arith.mulf %53, %cst_18 : f32
    %c0_19 = arith.constant 0 : index
    %c0_20 = arith.constant 0 : index
    %55 = memref.load %arg5[%c0_19, %c0_20] : memref<1x1xf32, #tpu.memory_space<smem>>
    memref.store %54, %arg5[%c0_19, %c0_20] : memref<1x1xf32, #tpu.memory_space<smem>>
    return
  }
}

</mosaic_0001>

<bundles_post_ra>
// kernel: tpu_custom_call.1
= control target key start
LH: loop header
LB: loop body
LE: loop exit
PB: predicated region body
PF: predicated region fallthrough
CT: control target
= control target key end

     0   :  { %v33_v2 = vlaneseq  ;;  %v509_v3 = vmov 0.0|0.0   ;;  %v510_v7 = vmov 0.0   ;;  %vm511_vm0 = vmmov 0   ;;  %s633_s0 = inlined_call_operand.<no memory space> [shape: f32[1,1], index: 0, kind: input, shape index: {}]   ;;  %s634_s1 = inlined_call_operand.<no memory space> [shape: f32[1,1], index: 1, kind: input, shape index: {}]   ;;  %s635_s2 = inlined_call_operand.vmem [shape: f32[20,128], index: 2, kind: input, shape index: {}]   ;;  %s636_s3 = inlined_call_operand.vmem [shape: s32[1,20], index: 3, kind: input, shape index: {}]   ;;  %s637_s4 = inlined_call_operand.vmem [shape: s32[20,1], index: 4, kind: input, shape index: {}]   ;;  %s638_s5 = inlined_call_operand.hbm [shape: f32[1,1], index: 5, kind: output, shape index: {}]  }
   0x1   :  { %v548_v0 = vld [vmem:[%s635_s2] sm:$0xff]  ;;  %v553_v1 = vld [vmem:[%s635_s2 + $0x8] sm:$0xff]  ;;  %477 = vmatprep.subr.bf16.mxu0 %v509_v3  ;;  %449 = vmatprep.subr.bf16.mxu1 %v510_v7  ;;  %v512_v9 = vmov 0   ;;  %v30_v10 = vld [vmem:[%s637_s4 + $0x10] sm:$0xf] }
   0x2   :  { %v478_v4 = vpack.c.bf16 %v553_v1, %v548_v0  ;;  %v560_v5 = vld [vmem:[%s636_s3] ss:$0 sm:$0xff]  ;;  %446 = vmatprep.mubr.msk.f32.mxu0 %vm511_vm0, %v510_v7  ;;  %v568_v8 = vshrl.u32 %v33_v2, 7  ;;  %453 = vmatprep.mubr.msk.bf16.mxu1 %vm511_vm0, %v510_v7 }
   0x3   :  { %v28_v6 = vld [vmem:[%s637_s4] sm:$0xff]  ;;  %491 = vset.pattern.permute.xlu0 %v512_v9 }
   0x4   :  { %479 = vmatpush3.bf16.msra.mxu0 %v478_v4 }
   0x5   :  { %12 = vsyncpa [#allocation5], 0  ;;  %444 = vmatprep.subr.mxu0 %v510_v7  ;;  %v26_v11 = vld [vmem:[%s635_s2 + $0x10] sm:$0xf]  ;;  %vm60_vm1 = vcmask 1043456   ;;  %vm39_vm2 = vcmp.eq.s32.totalorder %v568_v8, %v560_v5  ;;  %43 = vperm.xlu0 %491, %v28_v6   ;;  %vm56_vm3 = vcmask 162816   ;;  %v359_v50 = vstv %s633_s0 }
   0x6   :  { %v415_v12 = vsel %vm39_vm2, 1.0, %v510_v7  ;;  %v29_v13 = vld [vmem:[%s637_s4 + $0x8] sm:$0xff]  ;;  %492 = vset.pattern.permute.xlu1 %v512_v9  ;;  %450 = vmatpush3.bf16.xpose.msra.mxu1 %v478_v4  ;;  %v135_v14 = vpack.c.bf16 %v26_v11, %v26_v11  ;;  %v41_v15 = vand.u32 127, %v33_v2  ;;  %vm183_vm5 = vcmask 31744   ;;  %s497_s10 = scalar_lea.hbm %s638_s5, 16 }
   0x7   :  { %49 = vperm.xlu1 %492, %v30_v10   ;;  %451 = vmatprep.subr.bf16.mxu1 %v510_v7  ;;  %v513_v42 = vmov 1.0   ;;  %v356_v43 = vsub.s32 0, %v568_v8  ;;  %v361_v52 = vstv %s634_s1  ;;  %vm365_vm8 = vcmask 158720   ;;  %p498_p0 = scmp.ne.s32.totalorder %s638_s5, %s497_s10  ;;  %p501_p1 = scmp.lt.u32.totalorder %s497_s10, %s638_s5 }
   0x8   :  { %445 = vmatpush3.msk.msra.mxu0 %vm60_vm1, %v26_v11  ;;  %vm387_vm9 = vcmask 155648  }
   0x9   :  { %447 = vmatmul.mubr.msk.f32.vlgmr.msra.gmra.mrb[0].mxu0 %vm56_vm3, %v415_v12  ;;  %46 = vperm.xlu0 %491, %v29_v13   ;;  %p503_p2 = pnand %p501_p1, %p498_p0 }
   0xa   :  { %457 = vmatprep.subr.mxu0 %v510_v7  ;;  %459 = vmatprep.mubr.msk.f32.mxu0 %vm511_vm0, %v510_v7 }
   0xe   :  { %452 = vmatpush3.bf16.xpose.msra.mxu1 %v135_v14 }
  0x84   :  { %v44_v16 = vpop.permute.xlu0 %43 }
  0x85   :  { %vm51_vm4 = vcmp.eq.s32.totalorder %v41_v15, %v44_v16 }
  0x86   :  { %v418_v17 = vsel %vm51_vm4, 1.0, %v510_v7  ;;  %v50_v22 = vpop.permute.xlu1 %49 }
  0x87   :  { %vm53_vm7 = vcmp.eq.s32.totalorder %v41_v15, %v50_v22 }
  0x88   :  { %v47_v18 = vpop.permute.xlu0 %46  ;;  %v420_v24 = vsel %vm53_vm7, 1.0, %v510_v7 }
  0x89   :  { %vm52_vm6 = vcmp.eq.s32.totalorder %v41_v15, %v47_v18 }
  0x8a   :  { %v419_v23 = vsel %vm52_vm6, 1.0, %v510_v7 }
  0xdc   :  { %v130_v19 = vpop.f32.mrb[0].mxu0 }
  0xdd   :  { %v136_v20 = vpack.c.bf16 %v130_v19, %v130_v19  ;;  %v448_v21 = vpop.f32.mrb[1].mxu0  ;;  %458 = vmatpush3.msk.msra.mxu0 %vm60_vm1, %v130_v19 }
  0xde   :  { %460 = vmatmul.mubr.msk.f32.vlgmr.msra.gmra.mrb[2].mxu0 %vm183_vm5, %v418_v17  ;;  %480 = vmatprep.subr.bf16.mxu0 %v509_v3 }
  0xdf   :  { %454 = vmatmul.mubr.bf16.vlgmr.msra.gmra.mrb[0].mxu1 %v136_v20  ;;  %462 = vmatprep.mubr.msk.f32.mxu0 %vm511_vm0, %v510_v7 }
  0xe2   :  { %463 = vmatmul.mubr.msk.f32.gmra.mrb[4].mxu0 %vm183_vm5, %v419_v23 }
  0xe3   :  { %465 = vmatprep.mubr.msk.f32.mxu0 %vm511_vm0, %v510_v7 }
  0xe6   :  { %466 = vmatmul.mubr.msk.f32.gmra.mrb[6].mxu0 %vm183_vm5, %v420_v24 }
  0xe7   :  { %474 = vmatprep.mubr.msk.f32.mxu0 %vm511_vm0, %v510_v7 }
 0x1b1   :  { %v262_v25 = vpop.f32.mrb[2].mxu0 }
 0x1b2   :  { %v171_v26 = vpop.f32.mrb[0].mxu1  ;;  %v461_v27 = vpop.f32.mrb[3].mxu0  ;;  %v276_v29 = vsub.f32 %v262_v25, %v548_v0 }
 0x1b3   :  { %v455_v28 = vpop.f32.mrb[1].mxu1  ;;  %v353_v47 = vmul.f32 0.2, %v171_v26 }
 0x1b4   :  { %v174_v30 = vpop.f32.mrb[2].mxu1  ;;  %v279_v35 = vmul.f32 %v276_v29, %v548_v0 }
 0x1b5   :  { %v456_v31 = vpop.f32.mrb[3].mxu1  ;;  %v267_v32 = vpop.f32.mrb[4].mxu0 }
 0x1b6   :  { %v277_v33 = vsub.f32 %v267_v32, %v553_v1  ;;  %v464_v34 = vpop.f32.mrb[5].mxu0 }
 0x1b8   :  { %v280_v36 = vmul.f32 %v277_v33, %v553_v1 }
 0x1b9   :  { %v272_v37 = vpop.f32.mrb[6].mxu0 }
 0x1ba   :  { %v481_v38 = vpack.c.bf16 %v280_v36, %v279_v35  ;;  %v467_v39 = vpop.f32.mrb[7].mxu0  ;;  %v278_v40 = vsub.f32 %v272_v37, %v26_v11 }
 0x1bc   :  { %482 = vmatpush3.bf16.xpose.msra.mxu0 %v481_v38  ;;  %v281_v41 = vmul.f32 %v278_v40, %v26_v11 }
 0x1bd   :  { %472 = vmatprep.subr.mxu0 %v510_v7 }
 0x1c4   :  { %473 = vmatpush3.xpose.msra.mxu0 %v281_v41 }
 0x1c7   :  { %475 = vmatmul.mubr.f32.vlgmr.msra.gmra.mrb[8].mxu0 %v513_v42 }
 0x29a   :  { %v348_v44 = vpop.f32.mrb[8].mxu0 }
 0x29b   :  { %v352_v45 = vmul.f32 0.25, %v348_v44  ;;  %v476_v46 = vpop.f32.mrb[9].mxu0 }
 0x29d   :  { %v357_v48 = vrot.slane %v352_v45, %v356_v43  ;;  %v363_v7 = vmul.f32 %v359_v50, %v352_v45 }
 0x29f   :  { %v358_v49 = vsel %vm39_vm2, %v357_v48, %v353_v47  ;;  %v364_v10 = vadd.f32 %v363_v7, %v361_v52 }
 0x2a0   :  { %v360_v51 = vmul.f32 %v359_v50, %v358_v49 }
 0x2a2   :  { %v362_v53 = vadd.f32 %v361_v52, %v360_v51 }
 0x2a4   :  { %v366_v54 = vsel %vm365_vm8, %v362_v53, -inf }
 0x2a5   :  { %v367_v55 = vrot.slane %v366_v54, 4 }
 0x2a7   :  { %v368_v56 = vmax.f32 %v366_v54, %v367_v55 }
 0x2a9   :  { %v369_v57 = vrot.slane %v368_v56, 2 }
 0x2ab   :  { %v370_v58 = vmax.f32 %v368_v56, %v369_v57 }
 0x2ad   :  { %v371_v59 = vrot.slane %v370_v58, 1 }
 0x2af   :  { %v372_v60 = vmax.f32 %v370_v58, %v371_v59 }
 0x2b1   :  { %v373_v61 = vsub.f32 %v362_v53, %v372_v60 }
 0x2b3   :  { %v374_v62 = vmul.f32 1.442695, %v373_v61 }
 0x2b5   :  { %493 = vpow2.f32 %v374_v62 }
 0x2bf   :  { %v494_v63 = vpop.eup %493 }
 0x2c0   :  { %v376_v0 = vsel %vm365_vm8, %v494_v63, 0.0 }
 0x2c1   :  { %v377_v1 = vrot.slane %v376_v0, 4 }
 0x2c3   :  { %v378_v2 = vadd.f32 %v377_v1, %v376_v0 }
 0x2c5   :  { %v379_v3 = vrot.slane %v378_v2, 2 }
 0x2c7   :  { %v380_v4 = vadd.f32 %v379_v3, %v378_v2 }
 0x2c9   :  { %v381_v5 = vrot.slane %v380_v4, 1 }
 0x2cb   :  { %v382_v6 = vadd.f32 %v381_v5, %v380_v4 }
 0x2cd   :  { %495 = vlog2.f32 %v382_v6 }
 0x2d7   :  { %v496_v8 = vpop.eup %495 }
 0x2d8   :  { %v384_v9 = vmul.f32 0.6931472, %v496_v8 }
 0x2da   :  { %v385_v11 = vadd.f32 %v384_v9, %v372_v60 }
 0x2dc   :  { %v386_v12 = vsub.f32 %v385_v11, %v364_v10 }
 0x2de   :  { %v388_v13 = vsel %vm387_vm9, %v386_v12, 0.0 }
 0x2df   :  { %389 = vadd.xlane.f32.xlu1 %v388_v13 }
 0x36c   :  { %v390_v14 = vpop.xlane.xlu1 %389 }
 0x36d   :  { %v391_v15 = vrot.slane %v390_v14, 4 }
 0x36f   :  { %v392_v16 = vadd.f32 %v391_v15, %v390_v14 }
 0x371   :  { %v393_v17 = vrot.slane %v392_v16, 2 }
 0x373   :  { %v394_v18 = vadd.f32 %v393_v17, %v392_v16 }
 0x375   :  { %v395_v19 = vrot.slane %v394_v18, 1 }
 0x377   :  { %v396_v20 = vadd.f32 %v395_v19, %v394_v18 }
 0x379   :  { %483 = vpush %v396_v20 }
 0x3aa   :  { %s484_s0 = spop %483 }
 0x3ab   :  { %s398_s1 = smul.f32 0.05, %s484_s0 }
 0x3ad   :  { %400 = sst [smem:[#allocation4]] %s398_s1 }
 0x3ae   :  { %506 = shalt.err (!%p503_p2)
}
 0x3af   :  { %s514_s15 = smov [#allocation4]  }
 0x3b0   :  { %408 = dma.smem_to_hbm %s514_s15, 16, %s638_s5, [#allocation5]  }
 0x3b1   :  { %507 = dma.done.wait [#allocation5], 16  }
 0x3b2   :  { %508 = vsyncadd [#allocation5], 4294967280 }
 0x3b3   :  { %412 = sfence }
 0x3b4   :  { %413 = vsyncpa [#allocation5], 1 }

</bundles_post_ra>
